<compile_context>
chip_gen: v6e
topology: v6e:2x2x1
jax: 0.10.0
libtpu: 0.0.40
codegen_flags: <defaults>
</compile_context>

<pallas_src>
import jax
import jax.numpy as jnp
from jax.experimental import pallas as pl
from jax.experimental.pallas import tpu as pltpu


def _mlp_kernel(x_ref, w1_ref, b1_ref, wl_ref, bl_ref, w2_ref, b2_ref,
                h1_ref, vq_ref, h_ref):
    x = x_ref[...]

    # layers[0]: x @ W1 + b1  (accumulate in f32 regardless of io dtype)
    h1 = jnp.dot(x, w1_ref[...], preferred_element_type=jnp.float32) + b1_ref[...]
    h1_ref[...] = h1.astype(h1_ref.dtype)

    # ReLU; dropout is identity at inference.  Cast back to the weight dtype
    # so the MXU runs bf16 x bf16 when io_dtype=bf16.
    a = jnp.maximum(h1, 0.0).astype(wl_ref.dtype)

    # self.linear: vq = relu(h1) @ Wlin + blin
    vq_ref[...] = (
        jnp.dot(a, wl_ref[...], preferred_element_type=jnp.float32) + bl_ref[...]
    ).astype(vq_ref.dtype)

    # layers[1]: h = relu(h1) @ W2 + b2
    h_ref[...] = (
        jnp.dot(a, w2_ref[...], preferred_element_type=jnp.float32) + b2_ref[...]
    ).astype(h_ref.dtype)


def mlp_model_forward(x, params, *, tile_n=4096, io_dtype=None):
    """Returns (h_list, h) matching MLP.forward with num_layers=2."""
    w1, b1, wl, bl, w2, b2 = params
    n, feat = x.shape
    hidden = w1.shape[1]
    label = w2.shape[1]

    # Optional bf16 I/O for the bandwidth-bound path.  Biases and all
    # accumulation / outputs stay f32.
    if io_dtype is not None and x.dtype != io_dtype:
        x = x.astype(io_dtype)
        w1 = w1.astype(io_dtype)
        wl = wl.astype(io_dtype)
        w2 = w2.astype(io_dtype)
    in_itemsize = jnp.dtype(x.dtype).itemsize

    # Row tile: multiple of 8 (sublane).  Cap so the grid has >= ~8 steps
    # (keeps both v7x TensorCores busy via the "parallel" row axis) while
    # never exceeding the requested tile_n.
    n8 = max(8, -(-n // 8) * 8)          # n rounded up to a multiple of 8
    min_steps = 8
    cap = -(-n8 // min_steps)            # rows per step for >= min_steps steps
    cap = max(8, -(-cap // 8) * 8)       # round up to sublane multiple
    tile = max(8, min(tile_n, n8, cap))

    grid = (pl.cdiv(n, tile),)

    # VMEM: 2x double-buffered row slabs (input + 3 f32 outputs) plus 2x the
    # weight/bias blocks (Pallas double-buffers inputs even with a constant
    # index_map) plus slack.  Clamp to <= 48 MiB (v7x has 64 MiB physical).
    slab = tile * (feat * in_itemsize + (hidden + feat + label) * 4)
    wbytes = (w1.size + wl.size + w2.size) * in_itemsize \
             + (b1.size + bl.size + b2.size) * 4
    vmem_bytes = int(2 * slab + 2 * wbytes + (1 << 20))
    vmem_bytes = min(max(vmem_bytes, 4 << 20), 48 << 20)

    h1, vq, h = pl.pallas_call(
        _mlp_kernel,
        out_shape=(
            jax.ShapeDtypeStruct((n, hidden), jnp.float32),
            jax.ShapeDtypeStruct((n, feat), jnp.float32),
            jax.ShapeDtypeStruct((n, label), jnp.float32),
        ),
        grid=grid,
        in_specs=[
            pl.BlockSpec((tile, feat), lambda i: (i, 0)),      # x rows
            pl.BlockSpec((feat, hidden), lambda i: (0, 0)),    # W1 (resident)
            pl.BlockSpec((1, hidden), lambda i: (0, 0)),       # b1
            pl.BlockSpec((hidden, feat), lambda i: (0, 0)),    # Wlin
            pl.BlockSpec((1, feat), lambda i: (0, 0)),         # blin
            pl.BlockSpec((hidden, label), lambda i: (0, 0)),   # W2
            pl.BlockSpec((1, label), lambda i: (0, 0)),        # b2
        ],
        out_specs=(
            pl.BlockSpec((tile, hidden), lambda i: (i, 0)),    # h1 rows
            pl.BlockSpec((tile, feat), lambda i: (i, 0)),      # vq rows
            pl.BlockSpec((tile, label), lambda i: (i, 0)),     # h rows
        ),
        compiler_params=pltpu.CompilerParams(
            dimension_semantics=("parallel",),
            vmem_limit_bytes=vmem_bytes,
        ),
    )(x, w1, b1, wl, bl, w2, b2)

    return [h1, vq], h


def init_params(key, feat_dim, hidden_dim, label_dim):
    """Deterministic Kaiming-uniform-ish init (mirrors nn.Linear defaults)."""
    ks = jax.random.split(key, 6)

    def linear(kw, kb, fan_in, fan_out):
        bound = 1.0 / jnp.sqrt(fan_in)
        # stored as [in, out] (transpose of torch's [out, in])
        w = jax.random.uniform(kw, (fan_in, fan_out), jnp.float32, -bound, bound)
        b = jax.random.uniform(kb, (1, fan_out), jnp.float32, -bound, bound)
        return w, b

    w1, b1 = linear(ks[0], ks[1], feat_dim, hidden_dim)   # layers[0]
    wl, bl = linear(ks[2], ks[3], hidden_dim, feat_dim)   # self.linear
    w2, b2 = linear(ks[4], ks[5], hidden_dim, label_dim)  # layers[1]
    return (w1, b1, wl, bl, w2, b2)


def _reference(x, params):
    w1, b1, wl, bl, w2, b2 = params
    h1 = x @ w1 + b1
    a = jnp.maximum(h1, 0.0)
    return h1, a @ wl + bl, a @ w2 + b2


if __name__ == "__main__":
    key = jax.random.PRNGKey(0)
    k_x, k_x2, k_x3, k_p = jax.random.split(key, 4)

    FEAT = 32    # conf['feat_dim']
    HIDDEN = 32  # conf['hidden_dim']
    LABEL = 16   # conf['label_dim']

    params = init_params(k_p, FEAT, HIDDEN, LABEL)

    # Case 1: tiny batch (single grid step).
    N1 = 8
    x1 = jax.random.normal(k_x, (N1, FEAT), dtype=jnp.float32)
    h_list, h = mlp_model_forward(x1, params)
    jax.block_until_ready((h_list, h))

    h1_ref, vq_ref, out_ref = _reference(x1, params)
    assert jnp.allclose(h_list[0], h1_ref, atol=1e-4)
    assert jnp.allclose(h_list[1], vq_ref, atol=1e-4)
    assert jnp.allclose(h, out_ref, atol=1e-4)

    # Case 2: N not a multiple of the tile -> multi-step grid with an implicit
    # (masked) partial tail block, no wrapper-side padding or slicing.
    N2 = 20
    x2 = jax.random.normal(k_x2, (N2, FEAT), dtype=jnp.float32)
    h_list2, h2 = mlp_model_forward(x2, params, tile_n=8)
    jax.block_until_ready((h_list2, h2))

    h1_ref2, vq_ref2, out_ref2 = _reference(x2, params)
    assert h_list2[0].shape == (N2, HIDDEN)
    assert h_list2[1].shape == (N2, FEAT)
    assert h2.shape == (N2, LABEL)
    assert jnp.allclose(h_list2[0], h1_ref2, atol=1e-4)
    assert jnp.allclose(h_list2[1], vq_ref2, atol=1e-4)
    assert jnp.allclose(h2, out_ref2, atol=1e-4)

    # Case 3: larger N with the default (auto-capped) tile and bf16 I/O.
    N3 = 300
    x3 = jax.random.normal(k_x3, (N3, FEAT), dtype=jnp.float32)
    h_list3, h3 = mlp_model_forward(x3, params, io_dtype=jnp.bfloat16)
    jax.block_until_ready((h_list3, h3))

    h1_ref3, vq_ref3, out_ref3 = _reference(x3, params)
    assert h_list3[0].shape == (N3, HIDDEN)
    assert jnp.allclose(h_list3[0], h1_ref3, atol=5e-2, rtol=5e-2)
    assert jnp.allclose(h_list3[1], vq_ref3, atol=5e-2, rtol=5e-2)
    assert jnp.allclose(h3, out_ref3, atol=5e-2, rtol=5e-2)

    print("KERNEL_OK")
</pallas_src>

<mosaic_0001>
module attributes {stable_mosaic.version = 11 : i64} {
  func.func @_mlp_kernel(%arg0: i32, %arg1: memref<8x32xf32, #tpu.memory_space<vmem>>, %arg2: memref<32x32xf32, #tpu.memory_space<vmem>>, %arg3: memref<1x32xf32, #tpu.memory_space<vmem>>, %arg4: memref<32x32xf32, #tpu.memory_space<vmem>>, %arg5: memref<1x32xf32, #tpu.memory_space<vmem>>, %arg6: memref<32x16xf32, #tpu.memory_space<vmem>>, %arg7: memref<1x16xf32, #tpu.memory_space<vmem>>, %arg8: memref<8x32xf32, #tpu.memory_space<vmem>>, %arg9: memref<8x32xf32, #tpu.memory_space<vmem>>, %arg10: memref<8x16xf32, #tpu.memory_space<vmem>>) attributes {dimension_semantics = [#tpu.dimension_semantics<parallel>], iteration_bounds = array<i64: 1>, scalar_prefetch = 0 : i64, scratch_operands = 0 : i64, tpu.core_type = #tpu.core_type<tc>, window_params = [{transform_indices = @transform_0, window_bounds = array<i64: 8, 32>}, {pipeline_mode = #tpu.pipeline_mode<synchronous>, transform_indices = @transform_1, window_bounds = array<i64: 32, 32>}, {pipeline_mode = #tpu.pipeline_mode<synchronous>, transform_indices = @transform_2, window_bounds = array<i64: 1, 32>}, {pipeline_mode = #tpu.pipeline_mode<synchronous>, transform_indices = @transform_3, window_bounds = array<i64: 32, 32>}, {pipeline_mode = #tpu.pipeline_mode<synchronous>, transform_indices = @transform_4, window_bounds = array<i64: 1, 32>}, {pipeline_mode = #tpu.pipeline_mode<synchronous>, transform_indices = @transform_5, window_bounds = array<i64: 32, 16>}, {pipeline_mode = #tpu.pipeline_mode<synchronous>, transform_indices = @transform_6, window_bounds = array<i64: 1, 16>}, {transform_indices = @transform_7, window_bounds = array<i64: 8, 32>}, {transform_indices = @transform_8, window_bounds = array<i64: 8, 32>}, {transform_indices = @transform_9, window_bounds = array<i64: 8, 16>}]} {
    %c0 = arith.constant 0 : index
    %c0_0 = arith.constant 0 : index
    %0 = vector.load %arg1[%c0, %c0_0] : memref<8x32xf32, #tpu.memory_space<vmem>>, vector<8x32xf32>
    %c0_1 = arith.constant 0 : index
    %c0_2 = arith.constant 0 : index
    %1 = vector.load %arg2[%c0_1, %c0_2] : memref<32x32xf32, #tpu.memory_space<vmem>>, vector<32x32xf32>
    %cst = arith.constant dense<0.000000e+00> : vector<8x32xf32>
    %2 = tpu.matmul %0, %1, %cst {dimension_numbers = #tpu.dot_dimension_numbers<[1], [0], [0], [1], [0, 0, 1, 1], [], []>} : vector<8x32xf32>, vector<32x32xf32>, vector<8x32xf32> -> vector<8x32xf32>
    %c0_3 = arith.constant 0 : index
    %c0_4 = arith.constant 0 : index
    %3 = vector.load %arg3[%c0_3, %c0_4] : memref<1x32xf32, #tpu.memory_space<vmem>>, vector<1x32xf32>
    %4 = vector.broadcast %3 : vector<1x32xf32> to vector<8x32xf32>
    %5 = arith.addf %2, %4 : vector<8x32xf32>
    %c0_5 = arith.constant 0 : index
    %c0_6 = arith.constant 0 : index
    %6 = vector.load %arg8[%c0_5, %c0_6] : memref<8x32xf32, #tpu.memory_space<vmem>>, vector<8x32xf32>
    tpu.vector_store %arg8[%c0_5, %c0_6], %5 {strides = array<i32>} : memref<8x32xf32, #tpu.memory_space<vmem>>, vector<8x32xf32>,
    %cst_7 = arith.constant 0.000000e+00 : f32
    %7 = vector.broadcast %cst_7 : f32 to vector<8x32xf32>
    %8 = arith.maximumf %5, %7 : vector<8x32xf32>
    %c0_8 = arith.constant 0 : index
    %c0_9 = arith.constant 0 : index
    %9 = vector.load %arg4[%c0_8, %c0_9] : memref<32x32xf32, #tpu.memory_space<vmem>>, vector<32x32xf32>
    %cst_10 = arith.constant dense<0.000000e+00> : vector<8x32xf32>
    %10 = tpu.matmul %8, %9, %cst_10 {dimension_numbers = #tpu.dot_dimension_numbers<[1], [0], [0], [1], [0, 0, 1, 1], [], []>} : vector<8x32xf32>, vector<32x32xf32>, vector<8x32xf32> -> vector<8x32xf32>
    %c0_11 = arith.constant 0 : index
    %c0_12 = arith.constant 0 : index
    %11 = vector.load %arg5[%c0_11, %c0_12] : memref<1x32xf32, #tpu.memory_space<vmem>>, vector<1x32xf32>
    %12 = vector.broadcast %11 : vector<1x32xf32> to vector<8x32xf32>
    %13 = arith.addf %10, %12 : vector<8x32xf32>
    %c0_13 = arith.constant 0 : index
    %c0_14 = arith.constant 0 : index
    %14 = vector.load %arg9[%c0_13, %c0_14] : memref<8x32xf32, #tpu.memory_space<vmem>>, vector<8x32xf32>
    tpu.vector_store %arg9[%c0_13, %c0_14], %13 {strides = array<i32>} : memref<8x32xf32, #tpu.memory_space<vmem>>, vector<8x32xf32>,
    %c0_15 = arith.constant 0 : index
    %c0_16 = arith.constant 0 : index
    %15 = vector.load %arg6[%c0_15, %c0_16] : memref<32x16xf32, #tpu.memory_space<vmem>>, vector<32x16xf32>
    %cst_17 = arith.constant dense<0.000000e+00> : vector<8x16xf32>
    %16 = tpu.matmul %8, %15, %cst_17 {dimension_numbers = #tpu.dot_dimension_numbers<[1], [0], [0], [1], [0, 0, 1, 1], [], []>} : vector<8x32xf32>, vector<32x16xf32>, vector<8x16xf32> -> vector<8x16xf32>
    %c0_18 = arith.constant 0 : index
    %c0_19 = arith.constant 0 : index
    %17 = vector.load %arg7[%c0_18, %c0_19] : memref<1x16xf32, #tpu.memory_space<vmem>>, vector<1x16xf32>
    %18 = vector.broadcast %17 : vector<1x16xf32> to vector<8x16xf32>
    %19 = arith.addf %16, %18 : vector<8x16xf32>
    %c0_20 = arith.constant 0 : index
    %c0_21 = arith.constant 0 : index
    %20 = vector.load %arg10[%c0_20, %c0_21] : memref<8x16xf32, #tpu.memory_space<vmem>>, vector<8x16xf32>
    tpu.vector_store %arg10[%c0_20, %c0_21], %19 {strides = array<i32>} : memref<8x16xf32, #tpu.memory_space<vmem>>, vector<8x16xf32>,
    return
  }
  func.func @transform_0(%arg0: i32) -> (i32, i32) {
    %c0_i32 = arith.constant 0 : i32
    %c0_i32_0 = arith.constant 0 : i32
    return %arg0, %c0_i32 : i32, i32
  }
  func.func @transform_1(%arg0: i32) -> (i32, i32) {
    %c0_i32 = arith.constant 0 : i32
    %c0_i32_0 = arith.constant 0 : i32
    %c0_i32_1 = arith.constant 0 : i32
    return %c0_i32, %c0_i32_0 : i32, i32
  }
  func.func @transform_2(%arg0: i32) -> (i32, i32) {
    %c0_i32 = arith.constant 0 : i32
    %c0_i32_0 = arith.constant 0 : i32
    %c0_i32_1 = arith.constant 0 : i32
    return %c0_i32, %c0_i32_0 : i32, i32
  }
  func.func @transform_3(%arg0: i32) -> (i32, i32) {
    %c0_i32 = arith.constant 0 : i32
    %c0_i32_0 = arith.constant 0 : i32
    %c0_i32_1 = arith.constant 0 : i32
    return %c0_i32, %c0_i32_0 : i32, i32
  }
  func.func @transform_4(%arg0: i32) -> (i32, i32) {
    %c0_i32 = arith.constant 0 : i32
    %c0_i32_0 = arith.constant 0 : i32
    %c0_i32_1 = arith.constant 0 : i32
    return %c0_i32, %c0_i32_0 : i32, i32
  }
  func.func @transform_5(%arg0: i32) -> (i32, i32) {
    %c0_i32 = arith.constant 0 : i32
    %c0_i32_0 = arith.constant 0 : i32
    %c0_i32_1 = arith.constant 0 : i32
    return %c0_i32, %c0_i32_0 : i32, i32
  }
  func.func @transform_6(%arg0: i32) -> (i32, i32) {
    %c0_i32 = arith.constant 0 : i32
    %c0_i32_0 = arith.constant 0 : i32
    %c0_i32_1 = arith.constant 0 : i32
    return %c0_i32, %c0_i32_0 : i32, i32
  }
  func.func @transform_7(%arg0: i32) -> (i32, i32) {
    %c0_i32 = arith.constant 0 : i32
    %c0_i32_0 = arith.constant 0 : i32
    return %arg0, %c0_i32 : i32, i32
  }
  func.func @transform_8(%arg0: i32) -> (i32, i32) {
    %c0_i32 = arith.constant 0 : i32
    %c0_i32_0 = arith.constant 0 : i32
    return %arg0, %c0_i32 : i32, i32
  }
  func.func @transform_9(%arg0: i32) -> (i32, i32) {
    %c0_i32 = arith.constant 0 : i32
    %c0_i32_0 = arith.constant 0 : i32
    return %arg0, %c0_i32 : i32, i32
  }
}

</mosaic_0001>

<bundles_post_ra>
// kernel: tpu_custom_call.1
= control target key start
LH: loop header
LB: loop body
LE: loop exit
PB: predicated region body
PF: predicated region fallthrough
CT: control target
= control target key end

     0   :  { %15 = vsyncpa [#allocation3], 0  ;;  %s605_s0 = inlined_call_operand.vmem [shape: f32[8,32], index: 0, kind: input, shape index: {}]   ;;  %s606_s1 = inlined_call_operand.vmem [shape: f32[32,32], index: 1, kind: input, shape index: {}]   ;;  %s607_s2 = inlined_call_operand.vmem [shape: f32[1,32], index: 2, kind: input, shape index: {}]   ;;  %s608_s3 = inlined_call_operand.hbm [shape: f32[32,32], index: 3, kind: input, shape index: {}]   ;;  %s609_s4 = inlined_call_operand.vmem [shape: f32[1,32], index: 4, kind: input, shape index: {}]   ;;  %s610_s5 = inlined_call_operand.vmem [shape: f32[32,16], index: 5, kind: input, shape index: {}]   ;;  %s611_s6 = inlined_call_operand.vmem [shape: f32[1,16], index: 6, kind: input, shape index: {}]   ;;  %s612_s7 = inlined_call_operand.hbm [shape: f32[8,32], index: 7, kind: output, shape index: {0}]   ;;  %s613_s8 = inlined_call_operand.hbm [shape: f32[8,32], index: 8, kind: output, shape index: {1}]   ;;  %s614_s9 = inlined_call_operand.hbm [shape: f32[8,16], index: 9, kind: output, shape index: {2}]  }
   0x1   :  { %16 = vsyncpa [#allocation4], 0 }
   0x2   :  { %17 = vsyncpa [#allocation7], 0  ;;  %s491_s30 = smov [#allocation2]  }
   0x3   :  { %s29_s10 = sshll.u32 %s491_s30, 4  ;;  %s30_s10 = int_to_ptr.vmem [resolvable:$true] %s29_s10 }
   0x4   :  { %s413_s11 = scalar_lea.vmem %s30_s10, 512  ;;  %p418_p1 = scmp.lt.s32.totalorder %s30_s10, %s30_s10 }
   0x5   :  { %p414_p0 = scmp.ne.s32.totalorder %s30_s10, %s413_s11  ;;  %p419_p2 = scmp.lt.s32.totalorder %s413_s11, %s413_s11 }
   0x7   :  { %p420_p3 = por %p419_p2, %p418_p1 }
   0x9   :  { %p421_p4 = pnand %p420_p3, %p414_p0 }
   0xb   :  { %424 = shalt.err (!%p421_p4)
}
   0xc   :  { %s492_s12 = smov 128   ;;  %s493_s13 = smov 8  }
   0xd   :  { %35 = dma.hbm_to_vmem [thread:$0]  %s608_s3, 512, %s30_s10, [#allocation3], %s492_s12, %s492_s12, %s493_s13  }
   0xe   :  { %485 = dma.done.wait [#allocation3], 512  }
   0xf   :  { %486 = vsyncadd [#allocation3], 4294966784  ;;  %v494_v0 = vmov 0.0   ;;  %vm495_vm0 = vmmov 0   ;;  %v49_v1 = vld [vmem:[%s606_s1 + $0x18] sm:$0xff]  ;;  %v48_v2 = vld [vmem:[%s606_s1 + $0x10] sm:$0xff] }
  0x10   :  { %364 = vmatprep.subr.mxu0 %v494_v0  ;;  %372 = vmatprep.mubr.msk.f32.mxu0 %vm495_vm0, %v494_v0  ;;  %v136_v3 = vld [vmem:[#allocation2 + $0x18] sm:$0xff]  ;;  %v47_v4 = vld [vmem:[%s606_s1 + $0x8] sm:$0xff]  ;;  %v46_v5 = vld [vmem:[%s606_s1] sm:$0xff]  ;;  %vm57_vm1 = vcmask 261120   ;;  %s496_s12 = smov [#allocation5]  }
  0x11   :  { %375 = vmatprep.subr.mxu1 %v494_v0  ;;  %383 = vmatprep.mubr.msk.f32.mxu1 %vm495_vm0, %v494_v0  ;;  %v45_v6 = vld [vmem:[%s605_s0] sm:$0xff]  ;;  %v221_v7 = vld [vmem:[%s610_s5 + $0x18] sm:$0xff]  ;;  %v135_v8 = vld [vmem:[#allocation2 + $0x10] sm:$0xff]  ;;  %s307_s13 = sshll.u32 %s496_s12, 4  ;;  %s308_s13 = int_to_ptr.vmem [resolvable:$true] %s307_s13 }
  0x12   :  { %365 = vmatpush3.msra.mxu0 %v49_v1  ;;  %376 = vmatpush3.msra.mxu1 %v136_v3  ;;  %v220_v9 = vld [vmem:[%s610_s5 + $0x10] sm:$0xff]  ;;  %v134_v10 = vld [vmem:[#allocation2 + $0x8] sm:$0xff]  ;;  %v133_v12 = vld [vmem:[#allocation2] sm:$0xff]  ;;  %p430_p6 = scmp.lt.s32.totalorder %s308_s13, %s308_s13 }
  0x13   :  { %366 = vmatprep.subr.mxu0 %v494_v0  ;;  %377 = vmatprep.subr.mxu1 %v494_v0  ;;  %v219_v11 = vld [vmem:[%s610_s5 + $0x8] sm:$0xff]  ;;  %v218_v13 = vld [vmem:[%s610_s5] sm:$0xff]  ;;  %s425_s5 = scalar_lea.vmem %s308_s13, 128 }
  0x14   :  { %367 = vmatpush3.msra.mxu0 %v48_v2  ;;  %378 = vmatpush3.msra.mxu1 %v135_v8  ;;  %v343_v14 = vld [vmem:[%s607_s2] ss:$0 sm:$0xff]  ;;  %p426_p5 = scmp.ne.s32.totalorder %s308_s13, %s425_s5  ;;  %p431_p7 = scmp.lt.s32.totalorder %s425_s5, %s425_s5 }
  0x15   :  { %368 = vmatprep.subr.mxu0 %v494_v0  ;;  %379 = vmatprep.subr.mxu1 %v494_v0 }
  0x16   :  { %369 = vmatpush3.msra.mxu0 %v47_v4  ;;  %380 = vmatpush3.msra.mxu1 %v134_v10  ;;  %p432_p8 = por %p431_p7, %p430_p6 }
  0x17   :  { %370 = vmatprep.subr.mxu0 %v494_v0  ;;  %381 = vmatprep.subr.mxu1 %v494_v0 }
  0x18   :  { %371 = vmatpush3.msra.mxu0 %v46_v5  ;;  %382 = vmatpush3.msra.mxu1 %v133_v12  ;;  %p433_p9 = pnand %p432_p8, %p426_p5 }
  0x19   :  { %373 = vmatmul.mubr.msk.f32.vlgmr.msra.gmra.mxu0 %vm57_vm1, %v45_v6  ;;  %386 = vmatprep.subr.mxu0 %v494_v0 }
  0x1a   :  { %387 = vmatpush3.msra.mxu0 %v221_v7  ;;  %394 = vmatprep.mubr.msk.f32.mxu0 %vm495_vm0, %v494_v0 }
  0x1b   :  { %388 = vmatprep.subr.mxu0 %v494_v0 }
  0x1c   :  { %389 = vmatpush3.msra.mxu0 %v220_v9 }
  0x1d   :  { %390 = vmatprep.subr.mxu0 %v494_v0 }
  0x1e   :  { %391 = vmatpush3.msra.mxu0 %v219_v11 }
  0x1f   :  { %392 = vmatprep.subr.mxu0 %v494_v0 }
  0x20   :  { %393 = vmatpush3.msra.mxu0 %v218_v13 }
  0xd9   :  { %v127_v15 = vpop.f32.mrf.mxu0 }
  0xda   :  { %v128_v16 = vadd.f32 %v343_v14, %v127_v15 }
  0xdb   :  { %v374_v17 = vpop.f32.mrf.mxu0 }
  0xdc   :  { %v132_v18 = vmax.f32 %v128_v16, 0.0  ;;  %131 = vst.msk [vmem:[#allocation5] sm:$0xff] %vm57_vm1, %v128_v16 }
  0xde   :  { %384 = vmatmul.mubr.msk.f32.vlgmr.msra.gmra.mxu1 %vm57_vm1, %v132_v18  ;;  %395 = vmatmul.mubr.msk.f32.vlgmr.msra.gmra.mxu0 %vm57_vm1, %v132_v18 }
  0xdf   :  { %436 = shalt.err (!%p433_p9)
}
  0xe0   :  { %310 = dma.vmem_to_hbm [thread:$0]  %s308_s13, 128, %s612_s7, [#allocation4]   ;;  %v345_v19 = vld [vmem:[%s609_s4] ss:$0 sm:$0xff]  ;;  %vm299_vm2 = vcmask 130048  }
  0xe1   :  { %v347_v20 = vld [vmem:[%s611_s6] ss:$0 sm:$0xff]  ;;  %s497_s19 = smov [#allocation6]   ;;  %s498_s20 = smov [#allocation8]  }
  0xe2   :  { %s317_s3 = sshll.u32 %s497_s19, 4  ;;  %s327_s21 = sshll.u32 %s498_s20, 4  ;;  %s318_s3 = int_to_ptr.vmem [resolvable:$true] %s317_s3  ;;  %s328_s21 = int_to_ptr.vmem [resolvable:$true] %s327_s21 }
  0xe3   :  { %s445_s4 = scalar_lea.vmem %s318_s3, 128  ;;  %p450_p11 = scmp.lt.s32.totalorder %s318_s3, %s318_s3 }
  0xe4   :  { %p446_p10 = scmp.ne.s32.totalorder %s318_s3, %s445_s4  ;;  %p451_p12 = scmp.lt.s32.totalorder %s445_s4, %s445_s4 }
  0xe6   :  { %p452_p13 = por %p451_p12, %p450_p11 }
  0xe8   :  { %p453_p0 = pnand %p452_p13, %p446_p10 }
 0x19e   :  { %v213_v21 = vpop.f32.mrf.mxu1  ;;  %v295_v22 = vpop.f32.mrf.mxu0 }
 0x19f   :  { %v214_v23 = vadd.f32 %v345_v19, %v213_v21  ;;  %v296_v24 = vadd.f32 %v347_v20, %v295_v22 }
 0x1a0   :  { %v385_v25 = vpop.f32.mrf.mxu1  ;;  %v396_v26 = vpop.f32.mrf.mxu0 }
 0x1a1   :  { %217 = vst.msk [vmem:[#allocation6] sm:$0xff] %vm57_vm1, %v214_v23 }
 0x1a2   :  { %300 = vst.msk [vmem:[#allocation8] sm:$0xff] %vm299_vm2, %v296_v24 }
 0x1a3   :  { %456 = shalt.err (!%p453_p0)
}
 0x1a4   :  { %320 = dma.vmem_to_hbm [thread:$0]  %s318_s3, 128, %s613_s8, [#allocation7]  }
 0x1a5   :  { %s465_s22 = scalar_lea.vmem %s328_s21, 128  ;;  %p470_p2 = scmp.lt.s32.totalorder %s328_s21, %s328_s21 }
 0x1a6   :  { %p466_p1 = scmp.ne.s32.totalorder %s328_s21, %s465_s22  ;;  %p471_p3 = scmp.lt.s32.totalorder %s465_s22, %s465_s22 }
 0x1a8   :  { %p472_p4 = por %p471_p3, %p470_p2 }
 0x1aa   :  { %p473_p5 = pnand %p472_p4, %p466_p1 }
 0x1ac   :  { %476 = shalt.err (!%p473_p5)
}
 0x1ad   :  { %330 = dma.vmem_to_hbm [thread:$0]  %s328_s21, 128, %s614_s9, [#allocation7]  }
 0x1ae   :  { %487 = dma.done.wait [#allocation4], 128  }
 0x1af   :  { %488 = vsyncadd [#allocation4], 4294967168 }
 0x1b0   :  { %489 = dma.done.wait [#allocation7], 256  }
 0x1b1   :  { %490 = vsyncadd [#allocation7], 4294967040 }
 0x1b2   :  { %340 = vsyncpa [#allocation3], 1 }
 0x1b3   :  { %341 = vsyncpa [#allocation4], 1 }
 0x1b4   :  { %342 = vsyncpa [#allocation7], 1 }

</bundles_post_ra>
